<compile_context>
chip_gen: v7x
topology: tpu7x:2x2x1
jax: 0.10.0
libtpu: 0.0.40
codegen_flags: <defaults>
</compile_context>

<pallas_src>
import math
from functools import partial

import jax
import jax.numpy as jnp
from jax.experimental import pallas as pl
from jax.experimental.pallas import tpu as pltpu

_INV_SQRT2 = 1.0 / math.sqrt(2.0)
_SQRT_2_OVER_PI = math.sqrt(2.0 / math.pi)


def _gelu_exact(x):
    # torch.nn.GELU default = exact erf formulation
    return 0.5 * x * (1.0 + jax.lax.erf(x * _INV_SQRT2))


def _gelu_tanh(x):
    # torch.nn.GELU(approximate='tanh'); EUP tanh instead of erf polynomial on the VALU
    return 0.5 * x * (1.0 + jnp.tanh(_SQRT_2_OVER_PI * (x + 0.044715 * x * x * x)))


def _layernorm(x, gamma, beta, eps=1e-5):
    # LayerNorm over last dim, biased variance, eps=1e-5 (torch default).
    # One-pass stats: var = E[x^2] - E[x]^2 (clamped at 0 against f32 cancellation),
    # avoids the (x - mu)^2 full-tensor temporary.
    mu = jnp.mean(x, axis=-1, keepdims=True)
    ex2 = jnp.mean(x * x, axis=-1, keepdims=True)
    var = jnp.maximum(ex2 - mu * mu, 0.0)
    return (x - mu) * jax.lax.rsqrt(var + eps) * gamma + beta


def _mixer_block_kernel(
    x_ref,            # (Bt, V, C)
    g1_ref, be1_ref,  # LayerNorm 1: (1, C), (1, C)
    w1t_ref, b1_ref,  # Conv1d V -> Vi (transposed): (V, Vi), (1, Vi)
    w2t_ref, b2_ref,  # Conv1d Vi -> V (transposed): (Vi, V), (1, V)
    g2_ref, be2_ref,  # LayerNorm 2: (1, C), (1, C)
    w3t_ref, b3_ref,  # Linear C -> H (transposed): (C, H), (1, H)
    w4t_ref, b4_ref,  # Linear H -> C (transposed): (H, C), (1, C)
    o_ref,            # (Bt, V, C)
    *, V, C, matmul_dtype, gelu_tanh,
):
    Bt = x_ref.shape[0]
    gelu = _gelu_tanh if gelu_tanh else _gelu_exact

    # (Bt, V, C) -> (Bt*V, C): fold batch into the sublane/M dim (free reshape).
    x = x_ref[...].astype(jnp.float32).reshape(Bt * V, C)

    # ---------------- vertex mix (LN over C, Conv1d(k=1) mixing over V) ----------------
    y = _layernorm(x, g1_ref[...], be1_ref[...])
    # yT[b*C + c, v] = y[b*V + v, c]  -- minor-dim transpose so the matmul M dim is Bt*C.
    yT = jnp.swapaxes(y.reshape(Bt, V, C), 1, 2).reshape(Bt * C, V)
    z1 = jnp.dot(yT.astype(matmul_dtype), w1t_ref[...],
                 preferred_element_type=jnp.float32) + b1_ref[...]
    z1 = gelu(z1)
    z2T = jnp.dot(z1.astype(matmul_dtype), w2t_ref[...],
                  preferred_element_type=jnp.float32) + b2_ref[...]
    # back to (b, v)-row layout and apply the residual in f32
    z2 = jnp.swapaxes(z2T.reshape(Bt, C, V), 1, 2).reshape(Bt * V, C)
    x1 = z2 + x

    # ---------------- channel mix (LN over C, Linear C->H, GELU, Linear H->C) ----------
    y2 = _layernorm(x1, g2_ref[...], be2_ref[...])
    h1 = jnp.dot(y2.astype(matmul_dtype), w3t_ref[...],
                 preferred_element_type=jnp.float32) + b3_ref[...]
    h1 = gelu(h1)
    h2 = jnp.dot(h1.astype(matmul_dtype), w4t_ref[...],
                 preferred_element_type=jnp.float32) + b4_ref[...]
    out = h2 + x1

    o_ref[...] = out.reshape(Bt, V, C).astype(o_ref.dtype)


def prepare_params(params, matmul_dtype=jnp.bfloat16, gelu="exact"):
    """Pack torch-layout params into kernel layout ONCE: pre-transposed weights,
    (1, N) lane-vector biases. bf16 MXU operands by default (f32 accumulation);
    pass matmul_dtype=jnp.float32 for an exactness mode. gelu in {"exact","tanh"}."""
    C = params["ln1_g"].shape[0]
    Vi, V = params["w1"].shape
    H = params["w3"].shape[0]
    md = matmul_dtype
    return {
        "g1": params["ln1_g"].reshape(1, C).astype(jnp.float32),
        "be1": params["ln1_b"].reshape(1, C).astype(jnp.float32),
        "w1t": params["w1"].T.astype(md),                 # (V, Vi)
        "b1": params["b1"].reshape(1, Vi).astype(jnp.float32),
        "w2t": params["w2"].T.astype(md),                 # (Vi, V)
        "b2": params["b2"].reshape(1, V).astype(jnp.float32),
        "g2": params["ln2_g"].reshape(1, C).astype(jnp.float32),
        "be2": params["ln2_b"].reshape(1, C).astype(jnp.float32),
        "w3t": params["w3"].T.astype(md),                 # (C, H)
        "b3": params["b3"].reshape(1, H).astype(jnp.float32),
        "w4t": params["w4"].T.astype(md),                 # (H, C)
        "b4": params["b4"].reshape(1, C).astype(jnp.float32),
        "dims": (V, Vi, C, H),
        "matmul_dtype": md,
        "gelu_tanh": (gelu == "tanh"),
    }


def _vmem_limit_bytes(default=48 << 20):
    """Scoped-VMEM limit derived from the chip's physical VMEM capacity
    (v5e/v6e: 128 MiB -> ~102 MiB, v7x: 64 MiB/TC -> ~51 MiB), with headroom."""
    try:
        cap = int(getattr(pltpu.get_tpu_info(), "vmem_capacity_bytes", 0) or 0)
    except Exception:
        cap = 0
    if cap <= 0:
        return default
    limit = min(int(0.8 * cap), cap - (8 << 20))
    return limit if limit > (8 << 20) else default


def _choose_batch_tile(B, V, Vi, C, H, *, x_itemsize, md_itemsize,
                       weight_bytes, vmem_limit):
    """Largest Bt whose true VMEM footprint (double-buffered I/O blocks + live f32
    intermediates + matmul-dtype cast copies + resident weights) fits the scoped
    limit, capped so the grid keeps >= 4 steps when possible (both v7x TensorCores
    busy AND >= 2 steps/core of intra-core DMA/compute overlap)."""
    if B >= 4:
        cap = B // 4
    elif B >= 2:
        cap = B // 2
    else:
        cap = 1

    # per-batch-element VMEM footprint (bytes):
    io_bytes = 2 * 2 * V * C * x_itemsize                  # x + out blocks, double-buffered
    f32_acts = 4 * (5 * V * C + C * Vi + V * H)            # live f32 intermediates (rough)
    md_acts = md_itemsize * (2 * V * C + C * Vi + V * H)   # cast copies feeding the MXU
    per_b = io_bytes + f32_acts + md_acts

    # weights conservatively counted twice (pipeline may double-buffer them even
    # though their block index never changes) + scheduler/regalloc headroom.
    budget = int(0.65 * (vmem_limit - 2 * weight_bytes - (2 << 20)))
    bt = budget // max(per_b, 1)
    return int(max(1, min(bt, cap, B)))


def mixer_block(x, kp):
    B, V, C = x.shape
    Vk, Vi, Ck, H = kp["dims"]
    assert (V, C) == (Vk, Ck), "param / input shape mismatch"
    md = kp["matmul_dtype"]
    gelu_tanh = bool(kp.get("gelu_tanh", False))

    weight_bytes = sum(
        int(kp[k].size) * kp[k].dtype.itemsize
        for k in ("w1t", "w2t", "w3t", "w4t",
                  "b1", "b2", "b3", "b4", "g1", "be1", "g2", "be2"))

    vmem_limit = _vmem_limit_bytes()
    Bt = _choose_batch_tile(
        B, V, Vi, C, H,
        x_itemsize=x.dtype.itemsize,
        md_itemsize=jnp.dtype(md).itemsize,
        weight_bytes=weight_bytes,
        vmem_limit=vmem_limit)

    # cdiv grid: the last block may be partial; batch elements are independent, so
    # garbage in padded rows only produces garbage that the masked write-back drops.
    grid = (pl.cdiv(B, Bt),)

    def whole(shape):
        # full-array (batch-invariant) operand, resident across the grid
        return pl.BlockSpec(shape, lambda b: (0, 0))

    kernel = partial(_mixer_block_kernel, V=V, C=C, matmul_dtype=md,
                     gelu_tanh=gelu_tanh)

    cost = pl.CostEstimate(
        flops=4 * B * C * V * Vi + 4 * B * V * C * H,
        transcendentals=B * C * Vi + B * V * H,
        bytes_accessed=2 * B * V * C * x.dtype.itemsize + weight_bytes,
    )

    return pl.pallas_call(
        kernel,
        out_shape=jax.ShapeDtypeStruct((B, V, C), x.dtype),
        grid_spec=pltpu.PrefetchScalarGridSpec(
            num_scalar_prefetch=0,
            grid=grid,
            in_specs=[
                pl.BlockSpec((Bt, V, C), lambda b: (b, 0, 0)),   # x
                whole((1, C)), whole((1, C)),                    # LN1 gamma/beta
                whole((V, Vi)), whole((1, Vi)),                  # conv1 (transposed)
                whole((Vi, V)), whole((1, V)),                   # conv2 (transposed)
                whole((1, C)), whole((1, C)),                    # LN2 gamma/beta
                whole((C, H)), whole((1, H)),                    # linear1 (transposed)
                whole((H, C)), whole((1, C)),                    # linear2 (transposed)
            ],
            out_specs=pl.BlockSpec((Bt, V, C), lambda b: (b, 0, 0)),
        ),
        compiler_params=pltpu.CompilerParams(
            dimension_semantics=("parallel",),
            vmem_limit_bytes=vmem_limit,
        ),
        cost_estimate=cost,
    )(x, kp["g1"], kp["be1"], kp["w1t"], kp["b1"], kp["w2t"], kp["b2"],
      kp["g2"], kp["be2"], kp["w3t"], kp["b3"], kp["w4t"], kp["b4"])


def init_params(key, n_vertex, n_channel, vertex_factor=0.5, channel_factor=4):
    Vi = int(n_vertex * vertex_factor)
    H = int(n_channel * channel_factor)
    ks = jax.random.split(key, 8)
    scale = 0.05
    return {
        "ln1_g": jnp.ones((n_channel,), jnp.float32),
        "ln1_b": jnp.zeros((n_channel,), jnp.float32),
        "w1": scale * jax.random.normal(ks[0], (Vi, n_vertex), jnp.float32),
        "b1": scale * jax.random.normal(ks[1], (Vi,), jnp.float32),
        "w2": scale * jax.random.normal(ks[2], (n_vertex, Vi), jnp.float32),
        "b2": scale * jax.random.normal(ks[3], (n_vertex,), jnp.float32),
        "ln2_g": jnp.ones((n_channel,), jnp.float32),
        "ln2_b": jnp.zeros((n_channel,), jnp.float32),
        "w3": scale * jax.random.normal(ks[4], (H, n_channel), jnp.float32),
        "b3": scale * jax.random.normal(ks[5], (H,), jnp.float32),
        "w4": scale * jax.random.normal(ks[6], (n_channel, H), jnp.float32),
        "b4": scale * jax.random.normal(ks[7], (n_channel,), jnp.float32),
    }


def mixer_block_ref(x, p):
    # pure-JAX reference (mirrors the PyTorch forward exactly, f32)
    def ln(v, g, b, eps=1e-5):
        mu = jnp.mean(v, axis=-1, keepdims=True)
        var = jnp.mean((v - mu) ** 2, axis=-1, keepdims=True)
        return (v - mu) / jnp.sqrt(var + eps) * g + b

    y = ln(x, p["ln1_g"], p["ln1_b"])
    z1 = jnp.einsum("iv,bvc->bic", p["w1"], y) + p["b1"][None, :, None]
    z1 = _gelu_exact(z1)
    z2 = jnp.einsum("vi,bic->bvc", p["w2"], z1) + p["b2"][None, :, None]
    x1 = z2 + x
    y2 = ln(x1, p["ln2_g"], p["ln2_b"])
    h1 = _gelu_exact(y2 @ p["w3"].T + p["b3"])
    h2 = h1 @ p["w4"].T + p["b4"]
    return h2 + x1


if __name__ == "__main__":
    B, V, C = 8, 16, 32  # batch, n_vertex, n_channel (Bt=2, grid=4 here)
    key = jax.random.PRNGKey(0)
    kx, kparam = jax.random.split(key)
    x = jax.random.normal(kx, (B, V, C), jnp.float32)
    params = init_params(kparam, V, C)

    ref = mixer_block_ref(x, params)

    # exactness path: f32 MXU operands + exact-erf GELU, tight tolerance
    kp_f32 = prepare_params(params, matmul_dtype=jnp.float32)
    out_f32 = jax.block_until_ready(mixer_block(x, kp_f32))
    assert out_f32.shape == (B, V, C)
    assert jnp.allclose(out_f32, ref, atol=2e-5, rtol=2e-5), "f32 mismatch vs reference"

    # default fast path: bf16 MXU operands, f32 accumulation (looser tolerance)
    kp_bf16 = prepare_params(params)   # matmul_dtype defaults to bfloat16
    out_bf16 = jax.block_until_ready(mixer_block(x, kp_bf16))
    assert out_bf16.shape == (B, V, C)
    assert jnp.allclose(out_bf16, ref, atol=5e-2, rtol=5e-2), "bf16 mismatch vs reference"

    # fastest path: bf16 + tanh-approximate GELU (EUP); tiny deviation from exact GELU
    kp_fast = prepare_params(params, gelu="tanh")
    out_fast = jax.block_until_ready(mixer_block(x, kp_fast))
    assert out_fast.shape == (B, V, C)
    assert jnp.allclose(out_fast, ref, atol=5e-2, rtol=5e-2), "tanh-gelu mismatch vs reference"

    print("KERNEL_OK")
</pallas_src>

<mosaic_0001>
module attributes {stable_mosaic.version = 11 : i64} {
  func.func @_mixer_block_kernel(%arg0: i32, %arg1: memref<2x16x32xf32, #tpu.memory_space<vmem>>, %arg2: memref<1x32xf32, #tpu.memory_space<vmem>>, %arg3: memref<1x32xf32, #tpu.memory_space<vmem>>, %arg4: memref<16x8xf32, #tpu.memory_space<vmem>>, %arg5: memref<1x8xf32, #tpu.memory_space<vmem>>, %arg6: memref<8x16xf32, #tpu.memory_space<vmem>>, %arg7: memref<1x16xf32, #tpu.memory_space<vmem>>, %arg8: memref<1x32xf32, #tpu.memory_space<vmem>>, %arg9: memref<1x32xf32, #tpu.memory_space<vmem>>, %arg10: memref<32x128xf32, #tpu.memory_space<vmem>>, %arg11: memref<1x128xf32, #tpu.memory_space<vmem>>, %arg12: memref<128x32xf32, #tpu.memory_space<vmem>>, %arg13: memref<1x32xf32, #tpu.memory_space<vmem>>, %arg14: memref<2x16x32xf32, #tpu.memory_space<vmem>>) attributes {dimension_semantics = [#tpu.dimension_semantics<parallel>], iteration_bounds = array<i64: 4>, scalar_prefetch = 0 : i64, scratch_operands = 0 : i64, tpu.core_type = #tpu.core_type<tc>, window_params = [{transform_indices = @transform_0, window_bounds = array<i64: 2, 16, 32>}, {pipeline_mode = #tpu.pipeline_mode<synchronous>, transform_indices = @transform_1, window_bounds = array<i64: 1, 32>}, {pipeline_mode = #tpu.pipeline_mode<synchronous>, transform_indices = @transform_2, window_bounds = array<i64: 1, 32>}, {pipeline_mode = #tpu.pipeline_mode<synchronous>, transform_indices = @transform_3, window_bounds = array<i64: 16, 8>}, {pipeline_mode = #tpu.pipeline_mode<synchronous>, transform_indices = @transform_4, window_bounds = array<i64: 1, 8>}, {pipeline_mode = #tpu.pipeline_mode<synchronous>, transform_indices = @transform_5, window_bounds = array<i64: 8, 16>}, {pipeline_mode = #tpu.pipeline_mode<synchronous>, transform_indices = @transform_6, window_bounds = array<i64: 1, 16>}, {pipeline_mode = #tpu.pipeline_mode<synchronous>, transform_indices = @transform_7, window_bounds = array<i64: 1, 32>}, {pipeline_mode = #tpu.pipeline_mode<synchronous>, transform_indices = @transform_8, window_bounds = array<i64: 1, 32>}, {pipeline_mode = #tpu.pipeline_mode<synchronous>, transform_indices = @transform_9, window_bounds = array<i64: 32, 128>}, {pipeline_mode = #tpu.pipeline_mode<synchronous>, transform_indices = @transform_10, window_bounds = array<i64: 1, 128>}, {pipeline_mode = #tpu.pipeline_mode<synchronous>, transform_indices = @transform_11, window_bounds = array<i64: 128, 32>}, {pipeline_mode = #tpu.pipeline_mode<synchronous>, transform_indices = @transform_12, window_bounds = array<i64: 1, 32>}, {transform_indices = @transform_13, window_bounds = array<i64: 2, 16, 32>}]} {
    %c0 = arith.constant 0 : index
    %c0_0 = arith.constant 0 : index
    %c0_1 = arith.constant 0 : index
    %0 = vector.load %arg1[%c0, %c0_0, %c0_1] : memref<2x16x32xf32, #tpu.memory_space<vmem>>, vector<2x16x32xf32>
    %1 = vector.shape_cast %0 : vector<2x16x32xf32> to vector<32x32xf32>
    %c0_2 = arith.constant 0 : index
    %c0_3 = arith.constant 0 : index
    %2 = vector.load %arg2[%c0_2, %c0_3] : memref<1x32xf32, #tpu.memory_space<vmem>>, vector<1x32xf32>
    %c0_4 = arith.constant 0 : index
    %c0_5 = arith.constant 0 : index
    %3 = vector.load %arg3[%c0_4, %c0_5] : memref<1x32xf32, #tpu.memory_space<vmem>>, vector<1x32xf32>
    %cst = arith.constant dense<0.000000e+00> : vector<32xf32>
    %4 = vector.multi_reduction <add>, %1, %cst [1] : vector<32x32xf32> to vector<32xf32>
    %5 = vector.shape_cast %4 : vector<32xf32> to vector<32x1xf32>
    %cst_6 = arith.constant 3.200000e+01 : f32
    %6 = vector.broadcast %cst_6 : f32 to vector<32x1xf32>
    %7 = arith.divf %5, %6 : vector<32x1xf32>
    %8 = arith.mulf %1, %1 : vector<32x32xf32>
    %cst_7 = arith.constant dense<0.000000e+00> : vector<32xf32>
    %9 = vector.multi_reduction <add>, %8, %cst_7 [1] : vector<32x32xf32> to vector<32xf32>
    %10 = vector.shape_cast %9 : vector<32xf32> to vector<32x1xf32>
    %cst_8 = arith.constant 3.200000e+01 : f32
    %11 = vector.broadcast %cst_8 : f32 to vector<32x1xf32>
    %12 = arith.divf %10, %11 : vector<32x1xf32>
    %13 = arith.mulf %7, %7 : vector<32x1xf32>
    %14 = arith.subf %12, %13 : vector<32x1xf32>
    %cst_9 = arith.constant 0.000000e+00 : f32
    %15 = vector.broadcast %cst_9 : f32 to vector<32x1xf32>
    %16 = arith.maximumf %14, %15 : vector<32x1xf32>
    %17 = vector.broadcast %7 : vector<32x1xf32> to vector<32x32xf32>
    %18 = arith.subf %1, %17 : vector<32x32xf32>
    %cst_10 = arith.constant 9.99999974E-6 : f32
    %19 = vector.broadcast %cst_10 : f32 to vector<32x1xf32>
    %20 = arith.addf %16, %19 : vector<32x1xf32>
    %21 = math.rsqrt %20 : vector<32x1xf32>
    %22 = vector.broadcast %21 : vector<32x1xf32> to vector<32x32xf32>
    %23 = arith.mulf %18, %22 : vector<32x32xf32>
    %24 = vector.broadcast %2 : vector<1x32xf32> to vector<32x32xf32>
    %25 = arith.mulf %23, %24 : vector<32x32xf32>
    %26 = vector.broadcast %3 : vector<1x32xf32> to vector<32x32xf32>
    %27 = arith.addf %25, %26 : vector<32x32xf32>
    %28 = vector.shape_cast %27 : vector<32x32xf32> to vector<2x16x32xf32>
    %29 = tpu.transpose %28, [0, 2, 1] : vector<2x16x32xf32> -> vector<2x32x16xf32>
    %30 = vector.shape_cast %29 : vector<2x32x16xf32> to vector<64x16xf32>
    %c0_11 = arith.constant 0 : index
    %c0_12 = arith.constant 0 : index
    %31 = vector.load %arg4[%c0_11, %c0_12] : memref<16x8xf32, #tpu.memory_space<vmem>>, vector<16x8xf32>
    %cst_13 = arith.constant dense<0.000000e+00> : vector<64x8xf32>
    %32 = tpu.matmul %30, %31, %cst_13 {dimension_numbers = #tpu.dot_dimension_numbers<[1], [0], [0], [1], [0, 0, 1, 1], [], []>} : vector<64x16xf32>, vector<16x8xf32>, vector<64x8xf32> -> vector<64x8xf32>
    %c0_14 = arith.constant 0 : index
    %c0_15 = arith.constant 0 : index
    %33 = vector.load %arg5[%c0_14, %c0_15] : memref<1x8xf32, #tpu.memory_space<vmem>>, vector<1x8xf32>
    %34 = vector.broadcast %33 : vector<1x8xf32> to vector<64x8xf32>
    %35 = arith.addf %32, %34 : vector<64x8xf32>
    %cst_16 = arith.constant 5.000000e-01 : f32
    %36 = vector.broadcast %cst_16 : f32 to vector<64x8xf32>
    %37 = arith.mulf %36, %35 : vector<64x8xf32>
    %cst_17 = arith.constant 0.707106769 : f32
    %38 = vector.broadcast %cst_17 : f32 to vector<64x8xf32>
    %39 = arith.mulf %35, %38 : vector<64x8xf32>
    %40 = math.erf %39 : vector<64x8xf32>
    %cst_18 = arith.constant 1.000000e+00 : f32
    %41 = vector.broadcast %cst_18 : f32 to vector<64x8xf32>
    %42 = arith.addf %41, %40 : vector<64x8xf32>
    %43 = arith.mulf %37, %42 : vector<64x8xf32>
    %c0_19 = arith.constant 0 : index
    %c0_20 = arith.constant 0 : index
    %44 = vector.load %arg6[%c0_19, %c0_20] : memref<8x16xf32, #tpu.memory_space<vmem>>, vector<8x16xf32>
    %cst_21 = arith.constant dense<0.000000e+00> : vector<64x16xf32>
    %45 = tpu.matmul %43, %44, %cst_21 {dimension_numbers = #tpu.dot_dimension_numbers<[1], [0], [0], [1], [0, 0, 1, 1], [], []>} : vector<64x8xf32>, vector<8x16xf32>, vector<64x16xf32> -> vector<64x16xf32>
    %c0_22 = arith.constant 0 : index
    %c0_23 = arith.constant 0 : index
    %46 = vector.load %arg7[%c0_22, %c0_23] : memref<1x16xf32, #tpu.memory_space<vmem>>, vector<1x16xf32>
    %47 = vector.broadcast %46 : vector<1x16xf32> to vector<64x16xf32>
    %48 = arith.addf %45, %47 : vector<64x16xf32>
    %49 = vector.shape_cast %48 : vector<64x16xf32> to vector<2x32x16xf32>
    %50 = tpu.transpose %49, [0, 2, 1] : vector<2x32x16xf32> -> vector<2x16x32xf32>
    %51 = vector.shape_cast %50 : vector<2x16x32xf32> to vector<32x32xf32>
    %52 = arith.addf %51, %1 : vector<32x32xf32>
    %c0_24 = arith.constant 0 : index
    %c0_25 = arith.constant 0 : index
    %53 = vector.load %arg8[%c0_24, %c0_25] : memref<1x32xf32, #tpu.memory_space<vmem>>, vector<1x32xf32>
    %c0_26 = arith.constant 0 : index
    %c0_27 = arith.constant 0 : index
    %54 = vector.load %arg9[%c0_26, %c0_27] : memref<1x32xf32, #tpu.memory_space<vmem>>, vector<1x32xf32>
    %cst_28 = arith.constant dense<0.000000e+00> : vector<32xf32>
    %55 = vector.multi_reduction <add>, %52, %cst_28 [1] : vector<32x32xf32> to vector<32xf32>
    %56 = vector.shape_cast %55 : vector<32xf32> to vector<32x1xf32>
    %cst_29 = arith.constant 3.200000e+01 : f32
    %57 = vector.broadcast %cst_29 : f32 to vector<32x1xf32>
    %58 = arith.divf %56, %57 : vector<32x1xf32>
    %59 = arith.mulf %52, %52 : vector<32x32xf32>
    %cst_30 = arith.constant dense<0.000000e+00> : vector<32xf32>
    %60 = vector.multi_reduction <add>, %59, %cst_30 [1] : vector<32x32xf32> to vector<32xf32>
    %61 = vector.shape_cast %60 : vector<32xf32> to vector<32x1xf32>
    %cst_31 = arith.constant 3.200000e+01 : f32
    %62 = vector.broadcast %cst_31 : f32 to vector<32x1xf32>
    %63 = arith.divf %61, %62 : vector<32x1xf32>
    %64 = arith.mulf %58, %58 : vector<32x1xf32>
    %65 = arith.subf %63, %64 : vector<32x1xf32>
    %cst_32 = arith.constant 0.000000e+00 : f32
    %66 = vector.broadcast %cst_32 : f32 to vector<32x1xf32>
    %67 = arith.maximumf %65, %66 : vector<32x1xf32>
    %68 = vector.broadcast %58 : vector<32x1xf32> to vector<32x32xf32>
    %69 = arith.subf %52, %68 : vector<32x32xf32>
    %cst_33 = arith.constant 9.99999974E-6 : f32
    %70 = vector.broadcast %cst_33 : f32 to vector<32x1xf32>
    %71 = arith.addf %67, %70 : vector<32x1xf32>
    %72 = math.rsqrt %71 : vector<32x1xf32>
    %73 = vector.broadcast %72 : vector<32x1xf32> to vector<32x32xf32>
    %74 = arith.mulf %69, %73 : vector<32x32xf32>
    %75 = vector.broadcast %53 : vector<1x32xf32> to vector<32x32xf32>
    %76 = arith.mulf %74, %75 : vector<32x32xf32>
    %77 = vector.broadcast %54 : vector<1x32xf32> to vector<32x32xf32>
    %78 = arith.addf %76, %77 : vector<32x32xf32>
    %c0_34 = arith.constant 0 : index
    %c0_35 = arith.constant 0 : index
    %79 = vector.load %arg10[%c0_34, %c0_35] : memref<32x128xf32, #tpu.memory_space<vmem>>, vector<32x128xf32>
    %cst_36 = arith.constant dense<0.000000e+00> : vector<32x128xf32>
    %80 = tpu.matmul %78, %79, %cst_36 {dimension_numbers = #tpu.dot_dimension_numbers<[1], [0], [0], [1], [0, 0, 1, 1], [], []>} : vector<32x32xf32>, vector<32x128xf32>, vector<32x128xf32> -> vector<32x128xf32>
    %c0_37 = arith.constant 0 : index
    %c0_38 = arith.constant 0 : index
    %81 = vector.load %arg11[%c0_37, %c0_38] : memref<1x128xf32, #tpu.memory_space<vmem>>, vector<1x128xf32>
    %82 = vector.broadcast %81 : vector<1x128xf32> to vector<32x128xf32>
    %83 = arith.addf %80, %82 : vector<32x128xf32>
    %cst_39 = arith.constant 5.000000e-01 : f32
    %84 = vector.broadcast %cst_39 : f32 to vector<32x128xf32>
    %85 = arith.mulf %84, %83 : vector<32x128xf32>
    %cst_40 = arith.constant 0.707106769 : f32
    %86 = vector.broadcast %cst_40 : f32 to vector<32x128xf32>
    %87 = arith.mulf %83, %86 : vector<32x128xf32>
    %88 = math.erf %87 : vector<32x128xf32>
    %cst_41 = arith.constant 1.000000e+00 : f32
    %89 = vector.broadcast %cst_41 : f32 to vector<32x128xf32>
    %90 = arith.addf %89, %88 : vector<32x128xf32>
    %91 = arith.mulf %85, %90 : vector<32x128xf32>
    %c0_42 = arith.constant 0 : index
    %c0_43 = arith.constant 0 : index
    %92 = vector.load %arg12[%c0_42, %c0_43] : memref<128x32xf32, #tpu.memory_space<vmem>>, vector<128x32xf32>
    %cst_44 = arith.constant dense<0.000000e+00> : vector<32x32xf32>
    %93 = tpu.matmul %91, %92, %cst_44 {dimension_numbers = #tpu.dot_dimension_numbers<[1], [0], [0], [1], [0, 0, 1, 1], [], []>} : vector<32x128xf32>, vector<128x32xf32>, vector<32x32xf32> -> vector<32x32xf32>
    %c0_45 = arith.constant 0 : index
    %c0_46 = arith.constant 0 : index
    %94 = vector.load %arg13[%c0_45, %c0_46] : memref<1x32xf32, #tpu.memory_space<vmem>>, vector<1x32xf32>
    %95 = vector.broadcast %94 : vector<1x32xf32> to vector<32x32xf32>
    %96 = arith.addf %93, %95 : vector<32x32xf32>
    %97 = arith.addf %96, %52 : vector<32x32xf32>
    %98 = vector.shape_cast %97 : vector<32x32xf32> to vector<2x16x32xf32>
    %c0_47 = arith.constant 0 : index
    %c0_48 = arith.constant 0 : index
    %c0_49 = arith.constant 0 : index
    %99 = vector.load %arg14[%c0_47, %c0_48, %c0_49] : memref<2x16x32xf32, #tpu.memory_space<vmem>>, vector<2x16x32xf32>
    tpu.vector_store %arg14[%c0_47, %c0_48, %c0_49], %98 {strides = array<i32>} : memref<2x16x32xf32, #tpu.memory_space<vmem>>, vector<2x16x32xf32>,
    return
  }
  func.func @transform_0(%arg0: i32) -> (i32, i32, i32) {
    %c0_i32 = arith.constant 0 : i32
    %c0_i32_0 = arith.constant 0 : i32
    %c0_i32_1 = arith.constant 0 : i32
    return %arg0, %c0_i32, %c0_i32_0 : i32, i32, i32
  }
  func.func @transform_1(%arg0: i32) -> (i32, i32) {
    %c0_i32 = arith.constant 0 : i32
    %c0_i32_0 = arith.constant 0 : i32
    %c0_i32_1 = arith.constant 0 : i32
    return %c0_i32, %c0_i32_0 : i32, i32
  }
  func.func @transform_2(%arg0: i32) -> (i32, i32) {
    %c0_i32 = arith.constant 0 : i32
    %c0_i32_0 = arith.constant 0 : i32
    %c0_i32_1 = arith.constant 0 : i32
    return %c0_i32, %c0_i32_0 : i32, i32
  }
  func.func @transform_3(%arg0: i32) -> (i32, i32) {
    %c0_i32 = arith.constant 0 : i32
    %c0_i32_0 = arith.constant 0 : i32
    %c0_i32_1 = arith.constant 0 : i32
    return %c0_i32, %c0_i32_0 : i32, i32
  }
  func.func @transform_4(%arg0: i32) -> (i32, i32) {
    %c0_i32 = arith.constant 0 : i32
    %c0_i32_0 = arith.constant 0 : i32
    %c0_i32_1 = arith.constant 0 : i32
    return %c0_i32, %c0_i32_0 : i32, i32
  }
  func.func @transform_5(%arg0: i32) -> (i32, i32) {
    %c0_i32 = arith.constant 0 : i32
    %c0_i32_0 = arith.constant 0 : i32
    %c0_i32_1 = arith.constant 0 : i32
    return %c0_i32, %c0_i32_0 : i32, i32
  }
  func.func @transform_6(%arg0: i32) -> (i32, i32) {
    %c0_i32 = arith.constant 0 : i32
    %c0_i32_0 = arith.constant 0 : i32
    %c0_i32_1 = arith.constant 0 : i32
    return %c0_i32, %c0_i32_0 : i32, i32
  }
  func.func @transform_7(%arg0: i32) -> (i32, i32) {
    %c0_i32 = arith.constant 0 : i32
    %c0_i32_0 = arith.constant 0 : i32
    %c0_i32_1 = arith.constant 0 : i32
    return %c0_i32, %c0_i32_0 : i32, i32
  }
  func.func @transform_8(%arg0: i32) -> (i32, i32) {
    %c0_i32 = arith.constant 0 : i32
    %c0_i32_0 = arith.constant 0 : i32
    %c0_i32_1 = arith.constant 0 : i32
    return %c0_i32, %c0_i32_0 : i32, i32
  }
  func.func @transform_9(%arg0: i32) -> (i32, i32) {
    %c0_i32 = arith.constant 0 : i32
    %c0_i32_0 = arith.constant 0 : i32
    %c0_i32_1 = arith.constant 0 : i32
    return %c0_i32, %c0_i32_0 : i32, i32
  }
  func.func @transform_10(%arg0: i32) -> (i32, i32) {
    %c0_i32 = arith.constant 0 : i32
    %c0_i32_0 = arith.constant 0 : i32
    %c0_i32_1 = arith.constant 0 : i32
    return %c0_i32, %c0_i32_0 : i32, i32
  }
  func.func @transform_11(%arg0: i32) -> (i32, i32) {
    %c0_i32 = arith.constant 0 : i32
    %c0_i32_0 = arith.constant 0 : i32
    %c0_i32_1 = arith.constant 0 : i32
    return %c0_i32, %c0_i32_0 : i32, i32
  }
  func.func @transform_12(%arg0: i32) -> (i32, i32) {
    %c0_i32 = arith.constant 0 : i32
    %c0_i32_0 = arith.constant 0 : i32
    %c0_i32_1 = arith.constant 0 : i32
    return %c0_i32, %c0_i32_0 : i32, i32
  }
  func.func @transform_13(%arg0: i32) -> (i32, i32, i32) {
    %c0_i32 = arith.constant 0 : i32
    %c0_i32_0 = arith.constant 0 : i32
    %c0_i32_1 = arith.constant 0 : i32
    return %arg0, %c0_i32, %c0_i32_0 : i32, i32, i32
  }
}

</mosaic_0001>

<bundles_post_ra>
// kernel: tpu_custom_call.1
= control target key start
LH: loop header
LB: loop body
LE: loop exit
PB: predicated region body
PF: predicated region fallthrough
CT: control target
= control target key end

     0   :  { %s2121_s0 = inlined_call_operand.vmem [shape: f32[8,16,32], index: 0, kind: input, shape index: {}]   ;;  %s2122_s1 = inlined_call_operand.vmem [shape: f32[1,32], index: 1, kind: input, shape index: {}]   ;;  %s2123_s2 = inlined_call_operand.vmem [shape: f32[1,32], index: 2, kind: input, shape index: {}]   ;;  %s2124_s3 = inlined_call_operand.vmem [shape: f32[16,8], index: 3, kind: input, shape index: {}]   ;;  %s2125_s4 = inlined_call_operand.vmem [shape: f32[1,8], index: 4, kind: input, shape index: {}]   ;;  %s2126_s5 = inlined_call_operand.vmem [shape: f32[8,16], index: 5, kind: input, shape index: {}]   ;;  %s2127_s6 = inlined_call_operand.vmem [shape: f32[1,16], index: 6, kind: input, shape index: {}]   ;;  %s2128_s7 = inlined_call_operand.vmem [shape: f32[1,32], index: 7, kind: input, shape index: {}]   ;;  %s2129_s8 = inlined_call_operand.vmem [shape: f32[1,32], index: 8, kind: input, shape index: {}]   ;;  %s2130_s9 = inlined_call_operand.vmem [shape: f32[32,128], index: 9, kind: input, shape index: {}]   ;;  %s2131_s10 = inlined_call_operand.vmem [shape: f32[1,128], index: 10, kind: input, shape index: {}]   ;;  %s2132_s11 = inlined_call_operand.vmem [shape: f32[128,32], index: 11, kind: input, shape index: {}]   ;;  %s2133_s12 = inlined_call_operand.vmem [shape: f32[1,32], index: 12, kind: input, shape index: {}]   ;;  %s2134_s13 = inlined_call_operand.hbm [shape: f32[8,16,32], index: 13, kind: output, shape index: {}]  }
   0x1   :  { %2135 = sst [smem:[#allocation5_spill]] %s2121_s0 }
   0x2   :  { %2136 = sst [smem:[#allocation6_spill]] %s2122_s1 }
   0x3   :  { %18 = vsyncpa [#allocation3], 0 }
   0x4   :  { %20 = vsyncpa [#allocation3 + $0x1], 0  ;;  %s1830_s25 = smov 0   ;;  %s1832_s26 = smov 0  }
   0x5   :  { %s1834_s27 = smov 0   ;;  %s1836_s28 = smov 0  }
   0x6 LB: > { %s1851_s29 = sadd.s32 4294967295, %s1755_s28   ;;  %s1393_s30 = sadd.s32 4294967294, %s1755_s28   ;;  %s1755_s28 = sphi %s1836_s28, %s2144_s28   ;;  %s1751_s27 = sphi %s1834_s27, %s2143_s27   ;;  %s1747_s26 = sphi %s1832_s26, %s2142_s26   ;;  %s1743_s25 = sphi %s1830_s25, %s2141_s25  }
   0x7   : > { %s1855_s14 = sadd.s32 1, %s1755_s28   ;;  %s311_s15 = sadd.s32 1, %s1751_s27 }
   0x8   : > { %s308_s16 = ssub.s32 %s1755_s28, %s1855_s14  ;;  %p321_p0 = scmp.ne.s32.totalorder %s1751_s27, %s1747_s26 }
   0x9   : > { %p309_p1 = scmp.eq.s32.totalorder %s308_s16, 0  ;;  %p322_p2 = scmp.eq.s32.totalorder %s1851_s29, 3 }
   0xa   : > { %p327_p3 = scmp.ne.s32.totalorder %s1747_s26, %s1743_s25  ;;  %p328_p4 = scmp.eq.s32.totalorder %s1393_s30, 3 }
   0xb   : > { %s1866_s17 = scalar_select %p309_p1, %s1751_s27, %s311_s15  }
   0xc   : > { %p1868_p5 = por %p322_p2, %p321_p0  ;;  %p1872_p6 = por %p328_p4, %p327_p3 }
   0xd   : > { %p1396_p7 = scmp.ge.s32.totalorder %s1755_s28, 1  ;;  %p392_p8 = scmp.lt.s32.totalorder %s1755_s28, 5 }
   0xf   : > { %p393_p9 = pnand %p1396_p7, %p392_p8 }
  0x10   : > { %s1398_s20 = sshll.u32 (!%p393_p9), %s1851_s29, 1  ;;  %vm451_vm0 = vcmask (!%p393_p9), 261120   ;;  %s2139_s0 = sld [smem:[#allocation5_spill]] (!%p393_p9)  ;;  %v1402_v52 = vld [vmem:[%s2123_s2] ss:$0 sm:$0xff] (!%p393_p9)  ;;  %v602_v59 = vld [vmem:[%s2124_s3 + $0x8] sm:$0xff] (!%p393_p9) }
  0x11   : > { %396 = sbr.rel (%p393_p9) target bundleno = 1563 (0x61b), region = 72  ;;  %p438_p10 = scmp.lt.s32.totalorder (!%p393_p9), %s1398_s20, 7  ;;  %v601_v58 = vld [vmem:[%s2124_s3] sm:$0xff] (!%p393_p9)  ;;  %vm610_vm1 = vcmask (!%p393_p9), 130048   ;;  %vm788_vm2 = vcmask (!%p393_p9), 64512  }
  0x12   : > { %s2140_s1 = sld [smem:[#allocation6_spill]] (!%p393_p9)  ;;  %v1567_v60 = vpack.c.bf16 (!%p393_p9), %v602_v59, %v601_v58  ;;  %s1437_s30 = sshll.u32 (!%p393_p9), %s1851_s29, 9 }
  0x13   : > { %s1757_s23 = smov (!%p393_p9), [#allocation2]  }
  0x14   : > { %1568 = vmatprep.subr.bf16.mxu0 (!%p393_p9), %v1567_v60 }
  0x15   : > { %1570 = vmatpush3.bf16.msra.mxu0 (!%p393_p9), %v1567_v60 }
  0x18   : > { %s2146_s20 = smov (!%p438_p10, %s1398_s20), 7  ;;  %v1401_v50 = vld [vmem:[%s2140_s1] ss:$0 sm:$0xff] }
  0x19   : > { %s1435_s21 = sshll.u32 %s2146_s20, 4  ;;  %s2073_s20 = scalar_lea.hbm %s2134_s13, %s1437_s30 }
  0x1a   : > { %s442_s24 = scalar_lea.vmem %s2139_s0, %s1435_s21  ;;  %s434_s21 = sand.u32 1, %s1747_s26  }
  0x1b   : > { %v1882_v0 = vld [vmem:[%s442_s24] sm:$0xff]  ;;  %v1884_v1 = vld [vmem:[%s442_s24 + $0x8] sm:$0xff]  ;;  %v1895_v7 = vld [vmem:[%s442_s24 + $0x10] sm:$0xff]  ;;  %s2080_s29 = scalar_lea.sflag [#allocation3], %s434_s21 }
  0x1c   : > { %v452_v2 = vsel %vm451_vm0, %v1882_v0, 0.0  ;;  %v469_v3 = vmul.f32 %v1882_v0, %v1882_v0  ;;  %v470_v4 = vmul.f32 %v1884_v1, %v1884_v1  ;;  %v455_v6 = vsel %vm451_vm0, %v1884_v1, 0.0  ;;  %v1898_v9 = vld [vmem:[%s442_s24 + $0x18] sm:$0xff]  ;;  %s1397_s24 = sshll.u32 %s434_s21, 5 }
  0x1d   : > { %453 = vadd.xlane.f32.xlu0 %v452_v2  ;;  %v458_v10 = vsel %vm451_vm0, %v1895_v7, 0.0  ;;  %v471_v11 = vmul.f32 %v1895_v7, %v1895_v7  ;;  %v461_v12 = vsel %vm451_vm0, %v1898_v9, 0.0  ;;  %v472_v13 = vmul.f32 %v1898_v9, %v1898_v9  ;;  %s436_s0 = scalar_lea.vmem [#allocation2], %s1397_s24  ;;  %s1697_s24 = sshll.u32 %s1757_s23, 4  ;;  %s1698_s24 = int_to_ptr.vmem [resolvable:$false] %s1697_s24 }
  0x1e   : > { %v473_v5 = vsel %vm451_vm0, %v469_v3, 0.0  ;;  %v476_v8 = vsel %vm451_vm0, %v470_v4, 0.0  ;;  %s1331_s1 = sshll.u32 %s436_s0, 4  ;;  %s1699_s30 = scalar_lea.vmem %s1698_s24, 1024  ;;  %s2075_s1 = int_to_ptr.vmem [resolvable:$true] %s1331_s1 }
  0x1f   : > { %474 = vadd.xlane.f32.xlu1 %v473_v5  ;;  %v479_v14 = vsel %vm451_vm0, %v471_v11, 0.0  ;;  %v482_v15 = vsel %vm451_vm0, %v472_v13, 0.0  ;;  %s1693_s22 = scalar_lea.vmem %s2075_s1, 512  ;;  %p1700_p0 = scmp.lt.s32.totalorder %s2075_s1, %s1698_s24 }
  0x20   : > { %p1694_p11 = scmp.ne.s32.totalorder %s2075_s1, %s1693_s22  ;;  %p1701_p1 = scmp.lt.s32.totalorder %s1699_s30, %s1693_s22 }
  0x21   : > { %456 = vadd.xlane.f32.xlu0 %v455_v6 }
  0x22   : > { %p1695_p12 = pnand %p1694_p11, %p1868_p5  ;;  %p1702_p2 = por %p1701_p1, %p1700_p0 }
  0x23   : > { %477 = vadd.xlane.f32.xlu1 %v476_v8 }
  0x24   : > { %p1696_p13 = pneg %p1695_p12 }
  0x25   : > { %459 = vadd.xlane.f32.xlu0 %v458_v10 }
  0x26   : > { %p1703_p3 = pnand %p1702_p2, %p1696_p13 }
  0x27   : > { %462 = vadd.xlane.f32.xlu1 %v461_v12 }
  0x29   : > { %480 = vadd.xlane.f32.xlu0 %v479_v14 }
  0x2b   : > { %483 = vadd.xlane.f32.xlu1 %v482_v15 }
  0xaa   : > { %v454_v16 = vpop.xlane.xlu0 %453 }
  0xab   : > { %v465_v17 = vmul.f32 0.03125, %v454_v16 }
  0xac   : > { %v475_v18 = vpop.xlane.xlu1 %474 }
  0xad   : > { %v489_v19 = vmul.f32 %v465_v17, %v465_v17  ;;  %v485_v20 = vmul.f32 0.03125, %v475_v18  ;;  %v501_v47 = vsub.f32 %v1882_v0, %v465_v17 }
  0xae   : > { %v457_v21 = vpop.xlane.xlu0 %456 }
  0xaf   : > { %v493_v22 = vsub.f32 %v485_v20, %v489_v19  ;;  %v466_v23 = vmul.f32 0.03125, %v457_v21  ;;  %v780_v21 = vld [vmem:[%s2126_s5] sm:$0xff] }
  0xb0   : > { %v478_v24 = vpop.xlane.xlu1 %477  ;;  %1501 = vmatprep.subr.mxu1 %v780_v21 }
  0xb1   : > { %v497_v25 = vmax.f32 %v493_v22, 0.0  ;;  %v490_v26 = vmul.f32 %v466_v23, %v466_v23  ;;  %v486_v27 = vmul.f32 0.03125, %v478_v24  ;;  %v502_v53 = vsub.f32 %v1884_v1, %v466_v23  ;;  %1502 = vmatpush3.msra.mxu1 %v780_v21  ;;  %v1403_v22 = vld [vmem:[%s2125_s4] ss:$0 sm:$0xff] }
  0xb2   : > { %v460_v28 = vpop.xlane.xlu0 %459 }
  0xb3   : > { %v505_v29 = vadd.f32 1e-05, %v497_v25  ;;  %v494_v30 = vsub.f32 %v486_v27, %v490_v26  ;;  %v467_v31 = vmul.f32 0.03125, %v460_v28 }
  0xb4   : > { %v463_v32 = vpop.xlane.xlu1 %462 }
  0xb5   : > { %1653 = vrsqrt.f32 %v505_v29  ;;  %v498_v33 = vmax.f32 %v494_v30, 0.0  ;;  %v491_v34 = vmul.f32 %v467_v31, %v467_v31  ;;  %v468_v35 = vmul.f32 0.03125, %v463_v32 }
  0xb6   : > { %v481_v36 = vpop.xlane.xlu0 %480  ;;  %v503_v62 = vsub.f32 %v1895_v7, %v467_v31 }
  0xb7   : > { %v506_v37 = vadd.f32 1e-05, %v498_v33  ;;  %v487_v38 = vmul.f32 0.03125, %v481_v36  ;;  %v492_v39 = vmul.f32 %v468_v35, %v468_v35  ;;  %v504_v3 = vsub.f32 %v1898_v9, %v468_v35 }
  0xb8   : > { %v484_v40 = vpop.xlane.xlu1 %483 }
  0xb9   : > { %1655 = vrsqrt.f32 %v506_v37  ;;  %v495_v41 = vsub.f32 %v487_v38, %v491_v34  ;;  %v488_v42 = vmul.f32 0.03125, %v484_v40 }
  0xbb   : > { %v499_v43 = vmax.f32 %v495_v41, 0.0  ;;  %v496_v44 = vsub.f32 %v488_v42, %v492_v39 }
  0xbd   : > { %v507_v45 = vadd.f32 1e-05, %v499_v43  ;;  %v500_v46 = vmax.f32 %v496_v44, 0.0 }
  0xbf   : > { %v1654_v48 = vpop.eup %1653  ;;  %1657 = vrsqrt.f32 %v507_v45  ;;  %v508_v49 = vadd.f32 1e-05, %v500_v46 }
  0xc0   : > { %v513_v51 = vmul.f32 %v1654_v48, %v501_v47 }
  0xc1   : > { %1659 = vrsqrt.f32 %v508_v49 }
  0xc2   : > { %v523_v54 = vmul.f32 %v1401_v50, %v513_v51 }
  0xc3   : > { %v1656_v55 = vpop.eup %1655 }
  0xc4   : > { %v533_v56 = vadd.f32 %v1402_v52, %v523_v54  ;;  %v514_v57 = vmul.f32 %v1656_v55, %v502_v53 }
  0xc6   : > { %537 = vxpose.xlu0.b32.start [1/2] (short) (narrow) %v533_v56, 32  ;;  %v524_v61 = vmul.f32 %v1401_v50, %v514_v57 }
  0xc8   : > { %v534_v63 = vadd.f32 %v1402_v52, %v524_v61 }
  0xc9   : > { %v1658_v2 = vpop.eup %1657 }
  0xca   : > { %538 = vxpose.xlu0.b32.end [2/2] (short) (narrow) %v534_v63, 32  ;;  %v515_v4 = vmul.f32 %v1658_v2, %v503_v62 }
  0xcb   : > { %v1660_v5 = vpop.eup %1659 }
  0xcc   : > { %v525_v6 = vmul.f32 %v1401_v50, %v515_v4  ;;  %v516_v8 = vmul.f32 %v1660_v5, %v504_v3 }
  0xce   : > { %v535_v10 = vadd.f32 %v1402_v52, %v525_v6  ;;  %v526_v11 = vmul.f32 %v1401_v50, %v516_v8 }
  0xd0   : > { %569 = vxpose.xlu1.b32.start [1/2] (short) (narrow) %v535_v10, 32  ;;  %v536_v12 = vadd.f32 %v1402_v52, %v526_v11 }
  0xd4   : > { %570 = vxpose.xlu1.b32.end [2/2] (short) (narrow) %v536_v12, 32 }
 0x146   : > { %v553_v13 = vpop.trf.xlu0 }
 0x147   : > { %1489 = vmatprep.mubr.msk.f32.mxu0 %vm610_vm1, %v553_v13 }
 0x14a   : > { %v554_v14 = vpop.trf.xlu0 }
 0x14b   : > { %1490 = vmatmul.mubr.msk.f32.vlgmr.msra.gmra.mrb[0].mxu0 %vm610_vm1, %v554_v14 }
 0x14e   : > { %v555_v15 = vpop.trf.xlu0 }
 0x14f   : > { %1492 = vmatprep.mubr.msk.f32.mxu0 %vm610_vm1, %v555_v15 }
 0x150   : > { %v585_v16 = vpop.trf.xlu1 }
 0x152   : > { %v556_v17 = vpop.trf.xlu0 }
 0x153   : > { %1493 = vmatmul.mubr.msk.f32.gmra.mrb[2].mxu0 %vm610_vm1, %v556_v17 }
 0x154   : > { %v586_v18 = vpop.trf.xlu1  ;;  %1495 = vmatprep.mubr.msk.f32.mxu0 %vm610_vm1, %v585_v16 }
 0x157   : > { %1496 = vmatmul.mubr.msk.f32.gmra.mrb[4].mxu0 %vm610_vm1, %v586_v18 }
 0x158   : > { %v587_v19 = vpop.trf.xlu1 }
 0x159   : > { %1498 = vmatprep.mubr.msk.f32.mxu0 %vm610_vm1, %v587_v19  ;;  %v1412_v19 = vld [vmem:[%s2127_s6] ss:$0 sm:$0xff] }
 0x15c   : > { %v588_v20 = vpop.trf.xlu1 }
 0x15d   : > { %1499 = vmatmul.mubr.msk.f32.gmra.mrb[6].mxu0 %vm610_vm1, %v588_v20 }
 0x21e   : > { %v1491_v23 = vpop.f32.mrb[0].mxu0 }
 0x21f   : > { %v707_v24 = vadd.f32 %v1491_v23, %v1403_v22  ;;  %v701_v25 = vpop.f32.mrb[1].mxu0 }
 0x220   : > { %v702_v26 = vadd.f32 %v1403_v22, %v701_v25 }
 0x221   : > { %v749_v27 = vmul.f32 0.70710677, %v707_v24  ;;  %v741_v46 = vmul.f32 0.5, %v707_v24 }
 0x222   : > { %v748_v28 = vmul.f32 0.70710677, %v702_v26  ;;  %v740_v44 = vmul.f32 0.5, %v702_v26 }
 0x223   : > { %1661 = verf.f32 %v749_v27 }
 0x224   : > { %1663 = verf.f32 %v748_v28 }
 0x226   : > { %v1494_v29 = vpop.f32.mrb[2].mxu0 }
 0x227   : > { %v717_v30 = vadd.f32 %v1494_v29, %v1403_v22  ;;  %v711_v31 = vpop.f32.mrb[3].mxu0 }
 0x228   : > { %v712_v32 = vadd.f32 %v1403_v22, %v711_v31 }
 0x229   : > { %v751_v33 = vmul.f32 0.70710677, %v717_v30  ;;  %v743_v60 = vmul.f32 0.5, %v717_v30 }
 0x22a   : > { %v750_v34 = vmul.f32 0.70710677, %v712_v32  ;;  %v1497_v35 = vpop.f32.mrb[4].mxu0  ;;  %v742_v58 = vmul.f32 0.5, %v712_v32 }
 0x22b   : > { %1665 = verf.f32 %v751_v33  ;;  %v727_v36 = vadd.f32 %v1497_v35, %v1403_v22  ;;  %v721_v37 = vpop.f32.mrb[5].mxu0 }
 0x22c   : > { %1667 = verf.f32 %v750_v34  ;;  %v722_v38 = vadd.f32 %v1403_v22, %v721_v37 }
 0x22d   : > { %v1662_v39 = vpop.eup %1661  ;;  %v753_v40 = vmul.f32 0.70710677, %v727_v36  ;;  %v745_v6 = vmul.f32 0.5, %v727_v36 }
 0x22e   : > { %v1664_v41 = vpop.eup %1663  ;;  %v765_v42 = vadd.f32 1.0, %v1662_v39  ;;  %v752_v43 = vmul.f32 0.70710677, %v722_v38  ;;  %v744_v4 = vmul.f32 0.5, %v722_v38 }
 0x22f   : > { %1669 = verf.f32 %v753_v40  ;;  %v764_v45 = vadd.f32 1.0, %v1664_v41 }
 0x230   : > { %1671 = verf.f32 %v752_v43  ;;  %v1500_v47 = vpop.f32.mrb[6].mxu0  ;;  %v773_v51 = vmul.f32 %v765_v42, %v741_v46 }
 0x231   : > { %v737_v48 = vadd.f32 %v1500_v47, %v1403_v22  ;;  %v731_v49 = vpop.f32.mrb[7].mxu0  ;;  %v772_v50 = vmul.f32 %v764_v45, %v740_v44 }
 0x232   : > { %v732_v52 = vadd.f32 %v1403_v22, %v731_v49 }
 0x233   : > { %v755_v53 = vmul.f32 0.70710677, %v737_v48  ;;  %1503 = vmatprep.mubr.msk.f32.mxu1 %vm788_vm2, %v772_v50  ;;  %v747_v16 = vmul.f32 0.5, %v737_v48 }
 0x234   : > { %v754_v54 = vmul.f32 0.70710677, %v732_v52  ;;  %1504 = vmatmul.mubr.msk.f32.vlgmr.msra.gmra.mrb[0].mxu1 %vm788_vm2, %v773_v51  ;;  %v746_v14 = vmul.f32 0.5, %v732_v52 }
 0x235   : > { %v1666_v55 = vpop.eup %1665  ;;  %1673 = verf.f32 %v755_v53  ;;  %v1072_v53 = vld [vmem:[%s2130_s9] sm:$0xff] }
 0x236   : > { %v1668_v56 = vpop.eup %1667  ;;  %v767_v57 = vadd.f32 1.0, %v1666_v55  ;;  %1675 = verf.f32 %v754_v54  ;;  %v1074_v55 = vld [vmem:[%s2130_s9 + $0x10] sm:$0xff] }
 0x237   : > { %v766_v59 = vadd.f32 1.0, %v1668_v56  ;;  %v1075_v56 = vld [vmem:[%s2130_s9 + $0x18] sm:$0xff] }
 0x238   : > { %v775_v2 = vmul.f32 %v767_v57, %v743_v60  ;;  %v1575_v57 = vpack.c.bf16 %v1075_v56, %v1074_v55  ;;  %v1202_v60 = vld [vmem:[%s2132_s11 + $0x10] sm:$0xff] }
 0x239   : > { %v1670_v61 = vpop.eup %1669  ;;  %v774_v62 = vmul.f32 %v766_v59, %v742_v58  ;;  %v1200_v58 = vld [vmem:[%s2132_s11] sm:$0xff]  ;;  %v1201_v59 = vld [vmem:[%s2132_s11 + $0x8] sm:$0xff] }
 0x23a   : > { %v1672_v63 = vpop.eup %1671  ;;  %v769_v3 = vadd.f32 1.0, %v1670_v61  ;;  %v1579_v61 = vpack.c.bf16 %v1201_v59, %v1200_v58 }
 0x23b   : > { %v768_v5 = vadd.f32 1.0, %v1672_v63  ;;  %1506 = vmatprep.mubr.msk.f32.mxu1 %vm788_vm2, %v774_v62  ;;  %v1203_v62 = vld [vmem:[%s2132_s11 + $0x18] sm:$0xff] }
 0x23c   : > { %1507 = vmatmul.mubr.msk.f32.gmra.mrb[2].mxu1 %vm788_vm2, %v775_v2  ;;  %v777_v10 = vmul.f32 %v769_v3, %v745_v6  ;;  %v1583_v63 = vpack.c.bf16 %v1203_v62, %v1202_v60  ;;  %v1204_v2 = vld [vmem:[%s2132_s11 + $0x20] sm:$0xff]  ;;  %v1205_v3 = vld [vmem:[%s2132_s11 + $0x28] sm:$0xff]  ;;  %1580 = vmatprep.subr.bf16.mxu0 %v1579_v61  ;;  %v1207_v62 = vld [vmem:[%s2132_s11 + $0x38] sm:$0xff] }
 0x23d   : > { %v776_v8 = vmul.f32 %v768_v5, %v744_v4  ;;  %1582 = vmatpush3.bf16.msra.mxu0 %v1579_v61  ;;  %v1587_v4 = vpack.c.bf16 %v1205_v3, %v1204_v2  ;;  %v1206_v61 = vld [vmem:[%s2132_s11 + $0x30] sm:$0xff]  ;;  %v1208_v2 = vld [vmem:[%s2132_s11 + $0x40] sm:$0xff]  ;;  %v1209_v3 = vld [vmem:[%s2132_s11 + $0x48] sm:$0xff] }
 0x23e   : > { %1584 = vmatprep.subr.bf16.mxu0 %v1583_v63 }
 0x23f   : > { %v1674_v11 = vpop.eup %1673  ;;  %1509 = vmatprep.mubr.msk.f32.mxu1 %vm788_vm2, %v776_v8 }
 0x240   : > { %v1676_v12 = vpop.eup %1675  ;;  %v771_v13 = vadd.f32 1.0, %v1674_v11  ;;  %1510 = vmatmul.mubr.msk.f32.gmra.mrb[4].mxu1 %vm788_vm2, %v777_v10 }
 0x241   : > { %v770_v15 = vadd.f32 1.0, %v1676_v12  ;;  %1586 = vmatpush3.bf16.msra.mxu0 %v1583_v63  ;;  %v1591_v63 = vpack.c.bf16 %v1207_v62, %v1206_v61 }
 0x242   : > { %v779_v18 = vmul.f32 %v771_v13, %v747_v16  ;;  %1588 = vmatprep.subr.bf16.mxu0 %v1587_v4 }
 0x243   : > { %v778_v17 = vmul.f32 %v770_v15, %v746_v14 }
 0x245   : > { %1512 = vmatprep.mubr.msk.f32.mxu1 %vm788_vm2, %v778_v17  ;;  %1590 = vmatpush3.bf16.msra.mxu0 %v1587_v4  ;;  %v1595_v4 = vpack.c.bf16 %v1209_v3, %v1208_v2 }
 0x246   : > { %1513 = vmatmul.mubr.msk.f32.gmra.mrb[6].mxu1 %vm788_vm2, %v779_v18  ;;  %1592 = vmatprep.subr.bf16.mxu0 %v1591_v63 }
 0x249   : > { %1594 = vmatpush3.bf16.msra.mxu0 %v1591_v63 }
 0x24a   : > { %1596 = vmatprep.subr.bf16.mxu0 %v1595_v4 }
 0x24d   : > { %1598 = vmatpush3.bf16.msra.mxu0 %v1595_v4 }
 0x307   : > { %v1505_v20 = vpop.f32.mrb[0].mxu1 }
 0x308   : > { %v879_v21 = vpop.f32.mrb[1].mxu1  ;;  %v885_v23 = vadd.f32 %v1505_v20, %v1412_v19 }
 0x309   : > { %v880_v22 = vadd.f32 %v1412_v19, %v879_v21 }
 0x30b   : > { %918 = vxpose.xlu0.b32.start [1/4] (short) (narrow) %v880_v22, 16 }
 0x30f   : > { %919 = vxpose.xlu0.b32.cont [2/4] (short) (narrow) %v885_v23, 16  ;;  %v1508_v24 = vpop.f32.mrb[2].mxu1 }
 0x310   : > { %v889_v25 = vpop.f32.mrb[3].mxu1  ;;  %v895_v29 = vadd.f32 %v1508_v24, %v1412_v19 }
 0x311   : > { %v890_v26 = vadd.f32 %v1412_v19, %v889_v25 }
 0x313   : > { %v1511_v27 = vpop.f32.mrb[4].mxu1  ;;  %920 = vxpose.xlu0.b32.cont [3/4] (short) (narrow) %v890_v26, 16 }
 0x314   : > { %v899_v28 = vpop.f32.mrb[5].mxu1  ;;  %v905_v31 = vadd.f32 %v1511_v27, %v1412_v19 }
 0x315   : > { %v900_v30 = vadd.f32 %v1412_v19, %v899_v28 }
 0x317   : > { %950 = vxpose.xlu1.b32.start [1/4] (short) (narrow) %v900_v30, 16  ;;  %921 = vxpose.xlu0.b32.end [4/4] (short) (narrow) %v895_v29, 16 }
 0x319   : > { %v1514_v32 = vpop.f32.mrb[6].mxu1 }
 0x31a   : > { %v909_v33 = vpop.f32.mrb[7].mxu1  ;;  %v915_v35 = vadd.f32 %v1514_v32, %v1412_v19 }
 0x31b   : > { %951 = vxpose.xlu1.b32.cont [2/4] (short) (narrow) %v905_v31, 16  ;;  %v910_v34 = vadd.f32 %v1412_v19, %v909_v33 }
 0x31f   : > { %952 = vxpose.xlu1.b32.cont [3/4] (short) (narrow) %v910_v34, 16 }
 0x323   : > { %953 = vxpose.xlu1.b32.end [4/4] (short) (narrow) %v915_v35, 16 }
 0x38b   : > { %v934_v36 = vpop.trf.xlu0 }
 0x38c   : > { %v1952_v37 = vadd.f32 %v934_v36, %v1882_v0 }
 0x38e   : > { %v988_v38 = vsel %vm451_vm0, %v1952_v37, 0.0  ;;  %v1004_v39 = vmul.f32 %v1952_v37, %v1952_v37 }
 0x38f   : > { %989 = vadd.xlane.f32.xlu0 %v988_v38  ;;  %v935_v40 = vpop.trf.xlu0 }
 0x390   : > { %v1959_v41 = vadd.f32 %v935_v40, %v1884_v1  ;;  %v1008_v42 = vsel %vm451_vm0, %v1004_v39, 0.0  ;;  %v1421_v40 = vld [vmem:[%s2128_s7] ss:$0 sm:$0xff] }
 0x392   : > { %v991_v43 = vsel %vm451_vm0, %v1959_v41, 0.0  ;;  %v1005_v0 = vmul.f32 %v1959_v41, %v1959_v41 }
 0x393   : > { %1009 = vadd.xlane.f32.xlu0 %v1008_v42  ;;  %992 = vadd.xlane.f32.xlu1 %v991_v43 }
 0x394   : > { %v1011_v44 = vsel %vm451_vm0, %v1005_v0, 0.0  ;;  %v1422_v0 = vld [vmem:[%s2129_s8] ss:$0 sm:$0xff] }
 0x397   : > { %v966_v45 = vpop.trf.xlu1  ;;  %1012 = vadd.xlane.f32.xlu1 %v1011_v44 }
 0x398   : > { %v1968_v46 = vadd.f32 %v966_v45, %v1895_v7 }
 0x39a   : > { %v994_v1 = vsel %vm451_vm0, %v1968_v46, 0.0  ;;  %v1006_v47 = vmul.f32 %v1968_v46, %v1968_v46 }
 0x39b   : > { %v967_v48 = vpop.trf.xlu1  ;;  %995 = vadd.xlane.f32.xlu0 %v994_v1 }
 0x39c   : > { %v1975_v49 = vadd.f32 %v967_v48, %v1898_v9  ;;  %v1014_v50 = vsel %vm451_vm0, %v1006_v47, 0.0  ;;  %v1073_v9 = vld [vmem:[%s2130_s9 + $0x8] sm:$0xff] }
 0x39d   : > { %v1571_v54 = vpack.c.bf16 %v1073_v9, %v1072_v53 }
 0x39e   : > { %v997_v51 = vsel %vm451_vm0, %v1975_v49, 0.0  ;;  %v1007_v7 = vmul.f32 %v1975_v49, %v1975_v49 }
 0x39f   : > { %1015 = vadd.xlane.f32.xlu0 %v1014_v50  ;;  %998 = vadd.xlane.f32.xlu1 %v997_v51 }
 0x3a0   : > { %v1017_v52 = vsel %vm451_vm0, %v1007_v7, 0.0  ;;  %1572 = vmatprep.subr.bf16.mxu1 %v1571_v54 }
 0x3a1   : > { %1574 = vmatpush3.bf16.msra.mxu1 %v1571_v54 }
 0x3a2   : > { %1576 = vmatprep.subr.bf16.mxu1 %v1575_v57 }
 0x3a3   : > { %1018 = vadd.xlane.f32.xlu1 %v1017_v52 }
 0x3a5   : > { %1578 = vmatpush3.bf16.msra.mxu1 %v1575_v57 }
 0x41c   : > { %v990_v5 = vpop.xlane.xlu0 %989 }
 0x41d   : > { %v1000_v6 = vmul.f32 0.03125, %v990_v5  ;;  %v1210_v5 = vld [vmem:[%s2132_s11 + $0x50] sm:$0xff] }
 0x41f   : > { %v1024_v8 = vmul.f32 %v1000_v6, %v1000_v6  ;;  %v1036_v35 = vsub.f32 %v1952_v37, %v1000_v6  ;;  %v1211_v6 = vld [vmem:[%s2132_s11 + $0x58] sm:$0xff] }
 0x420   : > { %v993_v10 = vpop.xlane.xlu1 %992  ;;  %v1010_v11 = vpop.xlane.xlu0 %1009 }
 0x421   : > { %v1001_v12 = vmul.f32 0.03125, %v993_v10  ;;  %v1020_v13 = vmul.f32 0.03125, %v1010_v11  ;;  %v1212_v10 = vld [vmem:[%s2132_s11 + $0x60] sm:$0xff]  ;;  %v1213_v11 = vld [vmem:[%s2132_s11 + $0x68] sm:$0xff] }
 0x423   : > { %v1025_v14 = vmul.f32 %v1001_v12, %v1001_v12  ;;  %v1028_v15 = vsub.f32 %v1020_v13, %v1024_v8  ;;  %v1037_v44 = vsub.f32 %v1959_v41, %v1001_v12  ;;  %v1599_v8 = vpack.c.bf16 %v1211_v6, %v1210_v5  ;;  %v1214_v13 = vld [vmem:[%s2132_s11 + $0x70] sm:$0xff] }
 0x424   : > { %v1013_v16 = vpop.xlane.xlu1 %1012  ;;  %v1603_v12 = vpack.c.bf16 %v1213_v11, %v1212_v10 }
 0x425   : > { %v1032_v17 = vmax.f32 %v1028_v15, 0.0  ;;  %v1021_v18 = vmul.f32 0.03125, %v1013_v16  ;;  %1600 = vmatprep.subr.bf16.mxu0 %v1599_v8  ;;  %v1423_v16 = vld [vmem:[%s2131_s10] ss:$0 sm:$0xff] }
 0x426   : > { %1602 = vmatpush3.bf16.msra.mxu0 %v1599_v8 }
 0x427   : > { %v1040_v19 = vadd.f32 1e-05, %v1032_v17  ;;  %v1029_v20 = vsub.f32 %v1021_v18, %v1025_v14  ;;  %1604 = vmatprep.subr.bf16.mxu0 %v1603_v12  ;;  %v1215_v14 = vld [vmem:[%s2132_s11 + $0x78] sm:$0xff] }
 0x428   : > { %v996_v21 = vpop.xlane.xlu0 %995  ;;  %v1607_v15 = vpack.c.bf16 %v1215_v14, %v1214_v13 }
 0x429   : > { %1677 = vrsqrt.f32 %v1040_v19  ;;  %v1033_v22 = vmax.f32 %v1029_v20, 0.0  ;;  %v1002_v23 = vmul.f32 0.03125, %v996_v21 }
 0x42a   : > { %1606 = vmatpush3.bf16.msra.mxu0 %v1603_v12 }
 0x42b   : > { %v1041_v24 = vadd.f32 1e-05, %v1033_v22  ;;  %v1026_v27 = vmul.f32 %v1002_v23, %v1002_v23  ;;  %v1038_v52 = vsub.f32 %v1968_v46, %v1002_v23  ;;  %1608 = vmatprep.subr.bf16.mxu0 %v1607_v15 }
 0x42c   : > { %v999_v25 = vpop.xlane.xlu1 %998  ;;  %v1016_v26 = vpop.xlane.xlu0 %1015 }
 0x42d   : > { %1679 = vrsqrt.f32 %v1041_v24  ;;  %v1003_v28 = vmul.f32 0.03125, %v999_v25  ;;  %v1022_v29 = vmul.f32 0.03125, %v1016_v26 }
 0x42e   : > { %1610 = vmatpush3.bf16.msra.mxu0 %v1607_v15 }
 0x42f   : > { %v1030_v30 = vsub.f32 %v1022_v29, %v1026_v27  ;;  %v1027_v32 = vmul.f32 %v1003_v28, %v1003_v28  ;;  %v1039_v54 = vsub.f32 %v1975_v49, %v1003_v28 }
 0x430   : > { %v1019_v31 = vpop.xlane.xlu1 %1018 }
 0x431   : > { %v1034_v33 = vmax.f32 %v1030_v30, 0.0  ;;  %v1023_v34 = vmul.f32 0.03125, %v1019_v31 }
 0x433   : > { %v1678_v36 = vpop.eup %1677  ;;  %v1042_v38 = vadd.f32 1e-05, %v1034_v33  ;;  %v1031_v39 = vsub.f32 %v1023_v34, %v1027_v32 }
 0x434   : > { %v1048_v42 = vmul.f32 %v1678_v36, %v1036_v35 }
 0x435   : > { %1681 = vrsqrt.f32 %v1042_v38  ;;  %v1035_v43 = vmax.f32 %v1031_v39, 0.0 }
 0x436   : > { %v1058_v45 = vmul.f32 %v1421_v40, %v1048_v42 }
 0x437   : > { %v1680_v1 = vpop.eup %1679  ;;  %v1043_v47 = vadd.f32 1e-05, %v1035_v43 }
 0x438   : > { %v1049_v48 = vmul.f32 %v1680_v1, %v1037_v44  ;;  %v1068_v50 = vadd.f32 %v1422_v0, %v1058_v45  ;;  %v1428_v1 = vld [vmem:[%s2133_s12] ss:$0 sm:$0xff] }
 0x439   : > { %1683 = vrsqrt.f32 %v1043_v47 }
 0x43a   : > { %v1059_v51 = vmul.f32 %v1421_v40, %v1049_v48  ;;  %1523 = vmatprep.mubr.msk.f32.mxu1 %vm451_vm0, %v1068_v50 }
 0x43c   : > { %v1069_v7 = vadd.f32 %v1422_v0, %v1059_v51 }
 0x43e   : > { %1524 = vmatmul.mubr.msk.f32.vlgmr.msra.gmra.mrb[8].mxu1 %vm451_vm0, %v1069_v7 }
 0x43f   : > { %v1682_v53 = vpop.eup %1681 }
 0x440   : > { %v1050_v9 = vmul.f32 %v1682_v53, %v1038_v52 }
 0x442   : > { %v1060_v55 = vmul.f32 %v1421_v40, %v1050_v9 }
 0x443   : > { %v1684_v56 = vpop.eup %1683 }
 0x444   : > { %v1070_v57 = vadd.f32 %v1422_v0, %v1060_v55  ;;  %v1051_v58 = vmul.f32 %v1684_v56, %v1039_v54 }
 0x446   : > { %1526 = vmatprep.mubr.msk.f32.mxu1 %vm451_vm0, %v1070_v57  ;;  %v1061_v59 = vmul.f32 %v1421_v40, %v1051_v58 }
 0x448   : > { %v1071_v60 = vadd.f32 %v1422_v0, %v1061_v59 }
 0x44a   : > { %1527 = vmatmul.mubr.msk.f32.gmra.mrb[10].mxu1 %vm451_vm0, %v1071_v60 }
 0x511   : > { %v1525_v17 = vpop.f32.mrb[8].mxu1 }
 0x512   : > { %v1167_v18 = vadd.f32 %v1525_v17, %v1423_v16  ;;  %v1161_v19 = vpop.f32.mrb[9].mxu1 }
 0x513   : > { %v1162_v20 = vadd.f32 %v1423_v16, %v1161_v19 }
 0x514   : > { %v1185_v21 = vmul.f32 0.70710677, %v1167_v18  ;;  %v1181_v34 = vmul.f32 0.5, %v1167_v18 }
 0x515   : > { %v1184_v22 = vmul.f32 0.70710677, %v1162_v20  ;;  %v1180_v32 = vmul.f32 0.5, %v1162_v20 }
 0x516   : > { %1685 = verf.f32 %v1185_v21 }
 0x517   : > { %1687 = verf.f32 %v1184_v22 }
 0x51d   : > { %v1528_v23 = vpop.f32.mrb[10].mxu1 }
 0x51e   : > { %v1177_v24 = vadd.f32 %v1528_v23, %v1423_v16  ;;  %v1171_v25 = vpop.f32.mrb[11].mxu1 }
 0x51f   : > { %v1172_v26 = vadd.f32 %v1423_v16, %v1171_v25 }
 0x520   : > { %v1686_v27 = vpop.eup %1685  ;;  %v1187_v28 = vmul.f32 0.70710677, %v1177_v24  ;;  %v1183_v0 = vmul.f32 0.5, %v1177_v24 }
 0x521   : > { %v1688_v29 = vpop.eup %1687  ;;  %v1193_v30 = vadd.f32 1.0, %v1686_v27  ;;  %v1186_v31 = vmul.f32 0.70710677, %v1172_v26  ;;  %v1182_v42 = vmul.f32 0.5, %v1172_v26 }
 0x522   : > { %v1192_v33 = vadd.f32 1.0, %v1688_v29  ;;  %1689 = verf.f32 %v1187_v28 }
 0x523   : > { %1691 = verf.f32 %v1186_v31  ;;  %v1197_v36 = vmul.f32 %v1193_v30, %v1181_v34 }
 0x524   : > { %v1196_v35 = vmul.f32 %v1192_v33, %v1180_v32 }
 0x526   : > { %1561 = vmatprep.mubr.f32.mxu0 %v1196_v35 }
 0x527   : > { %1562 = vmatmul.mubr.f32.vlgmr.msra.gmra.mrb[8].mxu0 %v1197_v36 }
 0x52c   : > { %v1690_v38 = vpop.eup %1689 }
 0x52d   : > { %v1692_v39 = vpop.eup %1691  ;;  %v1195_v40 = vadd.f32 1.0, %v1690_v38 }
 0x52e   : > { %v1194_v43 = vadd.f32 1.0, %v1692_v39 }
 0x52f   : > { %v1199_v45 = vmul.f32 %v1195_v40, %v1183_v0 }
 0x530   : > { %v1198_v44 = vmul.f32 %v1194_v43, %v1182_v42 }
 0x532   : > { %1564 = vmatprep.mubr.f32.mxu0 %v1198_v44 }
 0x533   : > { %1565 = vmatmul.mubr.f32.gmra.mrb[10].mxu0 %v1199_v45 }
 0x5fa   : > { %v1563_v47 = vpop.f32.mrb[8].mxu0 }
 0x5fb   : > { %v1295_v48 = vadd.f32 %v1563_v47, %v1428_v1  ;;  %v1289_v50 = vpop.f32.mrb[9].mxu0 }
 0x5fc   : > { %v1290_v51 = vadd.f32 %v1428_v1, %v1289_v50 }
 0x5fd   : > { %v1309_v7 = vadd.f32 %v1295_v48, %v1959_v41 }
 0x5fe   : > { %v1308_v52 = vadd.f32 %v1290_v51, %v1952_v37 }
 0x5ff   : > { %1313 = vst.msk [vmem:[%s436_s0 + $0x8] sm:$0xff] %vm451_vm0, %v1309_v7 }
 0x600   : > { %1312 = vst.msk [vmem:[%s436_s0] sm:$0xff] %vm451_vm0, %v1308_v52 }
 0x606   : > { %v1566_v53 = vpop.f32.mrb[10].mxu0 }
 0x607   : > { %v1305_v9 = vadd.f32 %v1566_v53, %v1428_v1  ;;  %v1299_v54 = vpop.f32.mrb[11].mxu0 }
 0x608   : > { %v1300_v55 = vadd.f32 %v1428_v1, %v1299_v54 }
 0x609   : > { %v1311_v56 = vadd.f32 %v1305_v9, %v1975_v49 }
 0x60a   : > { %v1310_v37 = vadd.f32 %v1300_v55, %v1968_v46 }
 0x60b   : > { %1315 = vst.msk [vmem:[%s436_s0 + $0x18] sm:$0xff] %vm451_vm0, %v1311_v56 }
 0x60c   : > { %1314 = vst.msk [vmem:[%s436_s0 + $0x10] sm:$0xff] %vm451_vm0, %v1310_v37 }
 0x60d   : > { %1706 = shalt.err (!%p1703_p3)
}
 0x60e   : > { %s1707_s21 = scalar_lea.hbm %s2073_s20, 512  ;;  %s1711_s16 = scalar_lea.hbm %s2134_s13, 2048 }
 0x60f   : > { %p1708_p4 = scmp.ne.s32.totalorder %s2073_s20, %s1707_s21  ;;  %p1712_p9 = scmp.lt.u32.totalorder %s2073_s20, %s2134_s13 }
 0x610   : > { %p1713_p10 = scmp.lt.u32.totalorder %s1711_s16, %s1707_s21  ;;  %p1715_p12 = scmp.lt.u32.totalorder %s1707_s21, %s2073_s20 }
 0x611   : > { %p1709_p7 = pnand %p1708_p4, %p1868_p5 }
 0x612   : > { %p1714_p11 = por %p1713_p10, %p1712_p9 }
 0x613   : > { %p1710_p8 = pneg %p1709_p7 }
 0x614   : > { %p1716_p13 = por %p1715_p12, %p1714_p11 }
 0x616   : > { %p1717_p0 = pnand %p1716_p13, %p1710_p8 }
 0x618   : > { %1720 = shalt.err (!%p1717_p0)
}
 0x619   : > { %s1758_s22 = smov 128   ;;  %s1759_s30 = smov 8  }
 0x61a   : > { %1611 = dma.vmem_to_hbm [thread:$0]  (%p1868_p5), %s2075_s1, 512, %s2073_s20, %s2080_s29, %s1758_s22, %s1758_s22, %s1759_s30  }
 0x61b PF: > { %p1617_p1 = scmp.ge.s32.totalorder %s1755_s28, 2  ;;  %s1346_s0 = sand.u32 1, %s1743_s25  }
 0x61c   : > { %s1347_s21 = scalar_lea.sflag [#allocation3], %s1346_s0 }
 0x61d   : > { %p1614_p2 = pnand %p1617_p1, %p1872_p6 }
 0x61f   : > { %1738 = dma.done.wait (!%p1614_p2), %s1347_s21, 512  }
 0x620   : > { %1740 = vsyncadd (!%p1614_p2), %s1347_s21, 4294966784  ;;  %p23_p3 = scmp.ge.s32.totalorder %s1855_s14, 6   ;;  %s2141_s25 = smov %s1747_s26 }
 0x621   : > { %s2142_s26 = smov %s1751_s27  ;;  %s2143_s27 = smov %s1866_s17 }
 0x622   : > { %s2144_s28 = smov %s1855_s14  ;;  %25 = sbr.rel (!%p23_p3) target bundleno = 6 (0x6), region = 107 }
 0x629   :  { %1352 = vsyncpa [#allocation3], 1 }
 0x62a   :  { %1354 = vsyncpa [#allocation3 + $0x1], 1 }

</bundles_post_ra>
